<compile_context>
chip_gen: v5e
topology: v5e:2x2
jax: 0.10.0
libtpu: 0.0.40
codegen_flags: <defaults>
</compile_context>

<pallas_src>
import math

import jax
import jax.numpy as jnp
from jax.experimental import pallas as pl
from jax.experimental.pallas import tpu as pltpu


# Safe on every generation: == scoped default on v6e/v7x, < physical on v5e.
_VMEM_LIMIT_BYTES = 32 * 1024 * 1024
_MAX_BATCH_UNROLL = 16  # static unroll bound for the batched-swap kernel


def _itemsize(dtype) -> int:
    return jnp.dtype(dtype).itemsize


def _tile_caps(itemsize: int):
    """Per-axis tile caps.

    TM is the OUTPUT lane (store) dimension of the transpose -> keep it at 512
    so stores are wide, unmasked vst's.  TN scales inversely with the element
    width so one block stays ~1 MiB for every dtype (f32: 512x512, bf16:
    512x1024, int8: 512x2048).  Both caps are multiples of 128, which also
    covers the sublane packing requirement of every dtype (8/16/32).
    """
    tm_cap = 512
    tn_cap = max(256, ((1 << 20) // (tm_cap * itemsize)) // 128 * 128)
    return tm_cap, tn_cap


def _pick_tile(dim: int, cap: int) -> int:
    """Pick a block size for one axis.

    * dim <= cap: use the full dim (always a legal block extent).
    * otherwise: prefer the largest multiple of 128 <= cap that divides `dim`
      exactly; if none exists, fall back to `cap` with a pl.cdiv grid and
      padded edge blocks (legal: cap is a multiple of 128).
    Never returns a huge full-dim block, so VMEM use is always bounded.
    """
    if dim <= cap:
        return dim
    for t in range(cap, 127, -128):
        if dim % t == 0:
            return t
    return cap


def _pick_batch_tile(batch: int, slice_bytes: int) -> int:
    """How many (M, N) slices to pack into one block when slices are small.

    Amortizes the per-grid-step overhead; block stays <= ~2 MiB and the static
    unroll inside the kernel stays <= _MAX_BATCH_UNROLL.  Always a divisor of
    `batch`, so no padded batch blocks.
    """
    cap = min(_MAX_BATCH_UNROLL, batch, max(1, (2 << 20) // max(slice_bytes, 1)))
    for t in range(cap, 0, -1):
        if batch % t == 0:
            return t
    return 1


# ----------------------------------------------------------------------------
# Kernels
# ----------------------------------------------------------------------------
def _transpose2d_kernel(x_ref, o_ref):
    # (TM, TN) tile -> (TN, TM) tile: one XLU transpose per tile, rest is DMA.
    o_ref[...] = x_ref[...].T


def _transpose_2d(x):
    """y[j, i] = x[i, j] via a tiled, pipelined Pallas transpose kernel."""
    M, N = x.shape
    isz = _itemsize(x.dtype)
    tm_cap, tn_cap = _tile_caps(isz)
    TM = _pick_tile(M, tm_cap)  # output lane (store) dim -> kept large
    TN = _pick_tile(N, tn_cap)
    grid = (pl.cdiv(M, TM), pl.cdiv(N, TN))
    return pl.pallas_call(
        _transpose2d_kernel,
        out_shape=jax.ShapeDtypeStruct((N, M), x.dtype),
        grid=grid,
        in_specs=[pl.BlockSpec((TM, TN), lambda i, j: (i, j))],
        out_specs=pl.BlockSpec((TN, TM), lambda i, j: (j, i)),
        compiler_params=pltpu.CompilerParams(
            dimension_semantics=("parallel", "parallel"),
            vmem_limit_bytes=_VMEM_LIMIT_BYTES,
        ),
        cost_estimate=pl.CostEstimate(
            flops=0, transcendentals=0, bytes_accessed=2 * int(x.size) * isz
        ),
    )(x)


def _make_swap_kernel(tb: int):
    """Kernel for a (TB, TM, TN) -> (TB, TN, TM) block: TB unrolled 2-D transposes."""

    def kernel(x_ref, o_ref):
        for b in range(tb):  # static unroll, tb <= _MAX_BATCH_UNROLL
            o_ref[b] = x_ref[b].T

    return kernel


def _batched_swap_last2(x):
    """y[b, j, i] = x[b, i, j]; grid over (batch tiles, row tiles, col tiles)."""
    B, M, N = x.shape
    isz = _itemsize(x.dtype)
    tm_cap, tn_cap = _tile_caps(isz)
    TM = _pick_tile(M, tm_cap)  # output lane (store) dim
    TN = _pick_tile(N, tn_cap)
    TB = 1
    if TM == M and TN == N:
        # Small per-slice blocks: pack several batch slices per block so the
        # per-grid-step overhead amortizes.
        TB = _pick_batch_tile(B, M * N * isz)
    grid = (B // TB, pl.cdiv(M, TM), pl.cdiv(N, TN))
    return pl.pallas_call(
        _make_swap_kernel(TB),
        out_shape=jax.ShapeDtypeStruct((B, N, M), x.dtype),
        grid=grid,
        in_specs=[pl.BlockSpec((TB, TM, TN), lambda b, i, j: (b, i, j))],
        out_specs=pl.BlockSpec((TB, TN, TM), lambda b, i, j: (b, j, i)),
        compiler_params=pltpu.CompilerParams(
            dimension_semantics=("parallel", "parallel", "parallel"),
            vmem_limit_bytes=_VMEM_LIMIT_BYTES,
        ),
        cost_estimate=pl.CostEstimate(
            flops=0, transcendentals=0, bytes_accessed=2 * int(x.size) * isz
        ),
    )(x)


# ----------------------------------------------------------------------------
# Permutation decomposition (glue, plain Python / free row-major reshapes)
# ----------------------------------------------------------------------------
def _strip_unit_dims(shape, dims):
    """Drop size-1 axes (they move for free via the final reshape)."""
    keep = [a for a in range(len(shape)) if shape[a] != 1]
    remap = {old: new for new, old in enumerate(keep)}
    new_shape = tuple(shape[a] for a in keep)
    new_dims = tuple(remap[d] for d in dims if shape[d] != 1)
    return new_shape, new_dims


def _coalesce(shape, dims):
    """Merge input axes that stay adjacent & in-order in the output.

    Returns (collapsed_input_shape, collapsed_perm).
    """
    groups = [[dims[0]]]
    for d in dims[1:]:
        if d == groups[-1][-1] + 1:
            groups[-1].append(d)
        else:
            groups.append([d])
    order = sorted(range(len(groups)), key=lambda g: groups[g][0])
    in_shape = tuple(math.prod(shape[a] for a in groups[g]) for g in order)
    pos = {g: i for i, g in enumerate(order)}  # group -> collapsed input axis
    new_dims = tuple(pos[g] for g in range(len(groups)))
    return in_shape, new_dims


def _permute_general(x, nd):
    """Any (irreducible) permutation via at most 2 batched swaps per output axis.

    Places output axes left-to-right.  To bring axis P (currently behind a
    contiguous block A and ahead of a block B) to the front of the unplaced
    region:
        (placed*A, P, B) -> (placed*A, B, P)      [skip if B empty]
        (placed, A*B, P) -> (placed, P, A*B)
    Both steps are single batched-swap passes; A/B internal order is preserved
    so already-sorted suffixes are not disturbed.
    """
    r = len(nd)
    sizes = list(x.shape)
    cur = list(range(r))  # current memory order of (coalesced) input axes
    y = x
    for out_pos in range(r - 1):
        tgt = nd[out_pos]
        p = cur.index(tgt)
        if p == out_pos:
            continue
        placed = math.prod(sizes[a] for a in cur[:out_pos])
        a_axes = cur[out_pos:p]
        b_axes = cur[p + 1:]
        a_sz = math.prod(sizes[a] for a in a_axes)
        p_sz = sizes[tgt]
        b_sz = math.prod(sizes[a] for a in b_axes)
        if b_axes:
            # (placed*A, P, B) -> (placed*A, B, P)
            y = _batched_swap_last2(y.reshape(placed * a_sz, p_sz, b_sz))
            # (placed, A*B, P) -> (placed, P, A*B)
            y = _batched_swap_last2(y.reshape(placed, a_sz * b_sz, p_sz))
        else:
            # (placed, A, P) -> (placed, P, A)
            y = _batched_swap_last2(y.reshape(placed, a_sz, p_sz))
        cur = cur[:out_pos] + [tgt] + a_axes + b_axes
    return y


def pallas_permute(x, dims):
    n = x.ndim
    dims = tuple(int(d) % n for d in dims)
    assert sorted(dims) == list(range(n)), "dims must be a permutation of range(ndim)"
    out_shape = tuple(x.shape[d] for d in dims)
    if dims == tuple(range(n)):
        return x  # identity permute (PyTorch returns a view)
    s_shape, s_dims = _strip_unit_dims(x.shape, dims)
    if len(s_dims) <= 1 or s_dims == tuple(range(len(s_dims))):
        # Only size-1 axes move: free row-major reshape, no data movement.
        return x.reshape(out_shape)
    c_shape, nd = _coalesce(s_shape, s_dims)
    xc = x.reshape(c_shape)  # free row-major reshape (glue)
    if len(nd) == 2:  # coalesced to a plain 2-D transpose (single pass)
        y = _transpose_2d(xc)
    else:
        y = _permute_general(xc, nd)
    return y.reshape(out_shape)  # free row-major split of coalesced output axes


# ----------------------------------------------------------------------------
# Module port (no parameters in the original module)
# ----------------------------------------------------------------------------
class Permute:
    """Pallas port of fluxion's Permute layer (torch.permute semantics)."""

    def __init__(self, *dims: int) -> None:
        self.dims = dims

    def __call__(self, x):
        return pallas_permute(x, self.dims)


if __name__ == "__main__":
    key = jax.random.PRNGKey(0)
    x = jax.random.normal(key, (4, 16, 128), dtype=jnp.float32)

    # Docstring example: Permute(2, 0, 1): (D0, D1, D2) -> (D2, D0, D1)
    permute = Permute(2, 0, 1)
    y = permute(x)
    jax.block_until_ready(y)
    ref = jnp.transpose(x, (2, 0, 1))
    assert y.shape == ref.shape and y.dtype == ref.dtype
    assert jnp.array_equal(y, ref), "mismatch for dims=(2,0,1)"

    # Exercise all 3-D permutation code paths.
    for dims in [(0, 2, 1), (1, 2, 0), (1, 0, 2), (2, 1, 0), (0, 1, 2)]:
        out = Permute(*dims)(x)
        jax.block_until_ready(out)
        assert jnp.array_equal(out, jnp.transpose(x, dims)), f"mismatch for {dims}"

    # 4-D NCHW -> NHWC permute (coalesces to a batched last-two-dims swap).
    x4 = jax.random.normal(jax.random.PRNGKey(1), (2, 4, 16, 16), dtype=jnp.float32)
    out4 = Permute(0, 2, 3, 1)(x4)
    jax.block_until_ready(out4)
    assert jnp.array_equal(out4, jnp.transpose(x4, (0, 2, 3, 1))), "mismatch NCHW->NHWC"

    # Irreducible 4-D (B, H, S, D) -> (B, S, H, D): two batched-swap passes.
    x4b = jax.random.normal(jax.random.PRNGKey(2), (2, 4, 8, 128), dtype=jnp.float32)
    out4b = Permute(0, 2, 1, 3)(x4b)
    jax.block_until_ready(out4b)
    assert jnp.array_equal(out4b, jnp.transpose(x4b, (0, 2, 1, 3))), "mismatch (0,2,1,3)"

    # Fully general irreducible 4-D permutation (multi-pass mover path).
    x4c = jax.random.normal(jax.random.PRNGKey(4), (2, 3, 8, 16), dtype=jnp.float32)
    out4c = Permute(3, 1, 0, 2)(x4c)
    jax.block_until_ready(out4c)
    assert jnp.array_equal(out4c, jnp.transpose(x4c, (3, 1, 0, 2))), "mismatch (3,1,0,2)"

    # bf16 path + size-1 axis stripping (dtype-aware tiles, free unit-dim move).
    xb = jax.random.normal(jax.random.PRNGKey(3), (2, 1, 16, 256)).astype(jnp.bfloat16)
    outb = Permute(0, 3, 1, 2)(xb)
    jax.block_until_ready(outb)
    assert jnp.array_equal(outb, jnp.transpose(xb, (0, 3, 1, 2))), "mismatch bf16 (0,3,1,2)"

    print("KERNEL_OK")
</pallas_src>

<mosaic_0001>
module attributes {stable_mosaic.version = 11 : i64} {
  func.func @_transpose2d_kernel(%arg0: i32, %arg1: i32, %arg2: memref<64x128xf32, #tpu.memory_space<vmem>>, %arg3: memref<128x64xf32, #tpu.memory_space<vmem>>) attributes {dimension_semantics = [#tpu.dimension_semantics<parallel>, #tpu.dimension_semantics<parallel>], iteration_bounds = array<i64: 1, 1>, scalar_prefetch = 0 : i64, scratch_operands = 0 : i64, tpu.core_type = #tpu.core_type<tc>, window_params = [{transform_indices = @transform_0, window_bounds = array<i64: 64, 128>}, {transform_indices = @transform_1, window_bounds = array<i64: 128, 64>}]} {
    %c0 = arith.constant 0 : index
    %c0_0 = arith.constant 0 : index
    %0 = vector.load %arg2[%c0, %c0_0] : memref<64x128xf32, #tpu.memory_space<vmem>>, vector<64x128xf32>
    %1 = tpu.transpose %0, [1, 0] : vector<64x128xf32> -> vector<128x64xf32>
    %c0_1 = arith.constant 0 : index
    %c0_2 = arith.constant 0 : index
    %2 = vector.load %arg3[%c0_1, %c0_2] : memref<128x64xf32, #tpu.memory_space<vmem>>, vector<128x64xf32>
    tpu.vector_store %arg3[%c0_1, %c0_2], %1 {strides = array<i32>} : memref<128x64xf32, #tpu.memory_space<vmem>>, vector<128x64xf32>,
    return
  }
  func.func @transform_0(%arg0: i32, %arg1: i32) -> (i32, i32) {
    %c0_i32 = arith.constant 0 : i32
    return %arg0, %arg1 : i32, i32
  }
  func.func @transform_1(%arg0: i32, %arg1: i32) -> (i32, i32) {
    %c0_i32 = arith.constant 0 : i32
    return %arg1, %arg0 : i32, i32
  }
}

</mosaic_0001>

<bundles_post_ra>
// kernel: tpu_custom_call.1
= control target key start
LH: loop header
LB: loop body
LE: loop exit
PB: predicated region body
PF: predicated region fallthrough
CT: control target
= control target key end

     0   :  { %6 = vsyncpa [#allocation3], 0  ;;  %s116_s9 = smov [#allocation2]   ;;  %s117_s11 = smov 128   ;;  %s196_s0 = inlined_call_operand.hbm [shape: f32[64,128], index: 0, kind: input, shape index: {}]   ;;  %s197_s1 = inlined_call_operand.vmem [shape: f32[128,64], index: 1, kind: output, shape index: {}]  }
   0x1   :  { %s11_s8 = sshll.u32 %s196_s0, 4  ;;  %s13_s10 = sshll.u32 %s116_s9, 4  ;;  %s12_s8 = int_to_ptr.hbm [resolvable:$true] %s11_s8  ;;  %s14_s10 = int_to_ptr.vmem [resolvable:$true] %s13_s10 }
   0x2   :  { %s118_s12 = smov 8  }
   0x3   :  { %19 = dma.hbm_to_vmem [thread:$0]  %s12_s8, 1024, %s14_s10, [#allocation3], %s117_s11, %s117_s11, %s118_s12  }
   0x4   :  { %114 = dma.done.wait [#allocation3], 1024  }
   0x5   :  { %115 = vsyncadd [#allocation3], 4294966272  ;;  %v24_v0 = vld [vmem:[#allocation2] sm:$0xff]  ;;  %v25_v1 = vld [vmem:[#allocation2 + $0x8] sm:$0xff]  ;;  %vm64_vm0 = vcmask 523264  }
   0x6   :  { %32 = vxpose.xlu0.b32.start [1/8] (short) %v24_v0, 128  ;;  %v26_v2 = vld [vmem:[#allocation2 + $0x10] sm:$0xff]  ;;  %v27_v3 = vld [vmem:[#allocation2 + $0x18] sm:$0xff]  ;;  %v28_v4 = vld [vmem:[#allocation2 + $0x20] sm:$0xff] }
   0x7   :  { %v29_v5 = vld [vmem:[#allocation2 + $0x28] sm:$0xff]  ;;  %v30_v6 = vld [vmem:[#allocation2 + $0x30] sm:$0xff]  ;;  %v31_v7 = vld [vmem:[#allocation2 + $0x38] sm:$0xff] }
   0xe   :  { %33 = vxpose.xlu0.b32.cont [2/8] (short) %v25_v1, 128 }
  0x16   :  { %34 = vxpose.xlu0.b32.cont [3/8] (short) %v26_v2, 128 }
  0x1e   :  { %35 = vxpose.xlu0.b32.cont [4/8] (short) %v27_v3, 128 }
  0x26   :  { %36 = vxpose.xlu0.b32.cont [5/8] (short) %v28_v4, 128 }
  0x2e   :  { %37 = vxpose.xlu0.b32.cont [6/8] (short) %v29_v5, 128 }
  0x36   :  { %38 = vxpose.xlu0.b32.cont [7/8] (short) %v30_v6, 128 }
  0x3e   :  { %39 = vxpose.xlu0.b32.end [8/8] (short) %v31_v7, 128 }
  0xaa   :  { %v48_v8 = vpop.trf.xlu0 }
  0xab   :  { %65 = vst.msk [vmem:[%s197_s1] sm:$0xff] %vm64_vm0, %v48_v8 }
  0xb2   :  { %v49_v9 = vpop.trf.xlu0 }
  0xb3   :  { %66 = vst.msk [vmem:[%s197_s1 + $0x8] sm:$0xff] %vm64_vm0, %v49_v9 }
  0xba   :  { %v50_v10 = vpop.trf.xlu0 }
  0xbb   :  { %67 = vst.msk [vmem:[%s197_s1 + $0x10] sm:$0xff] %vm64_vm0, %v50_v10 }
  0xc2   :  { %v51_v11 = vpop.trf.xlu0 }
  0xc3   :  { %68 = vst.msk [vmem:[%s197_s1 + $0x18] sm:$0xff] %vm64_vm0, %v51_v11 }
  0xca   :  { %v52_v12 = vpop.trf.xlu0 }
  0xcb   :  { %69 = vst.msk [vmem:[%s197_s1 + $0x20] sm:$0xff] %vm64_vm0, %v52_v12 }
  0xd2   :  { %v53_v13 = vpop.trf.xlu0 }
  0xd3   :  { %70 = vst.msk [vmem:[%s197_s1 + $0x28] sm:$0xff] %vm64_vm0, %v53_v13 }
  0xda   :  { %v54_v14 = vpop.trf.xlu0 }
  0xdb   :  { %71 = vst.msk [vmem:[%s197_s1 + $0x30] sm:$0xff] %vm64_vm0, %v54_v14 }
  0xe2   :  { %v55_v15 = vpop.trf.xlu0 }
  0xe3   :  { %72 = vst.msk [vmem:[%s197_s1 + $0x38] sm:$0xff] %vm64_vm0, %v55_v15 }
  0xea   :  { %v56_v16 = vpop.trf.xlu0 }
  0xeb   :  { %73 = vst.msk [vmem:[%s197_s1 + $0x40] sm:$0xff] %vm64_vm0, %v56_v16 }
  0xf2   :  { %v57_v17 = vpop.trf.xlu0 }
  0xf3   :  { %74 = vst.msk [vmem:[%s197_s1 + $0x48] sm:$0xff] %vm64_vm0, %v57_v17 }
  0xfa   :  { %v58_v18 = vpop.trf.xlu0 }
  0xfb   :  { %75 = vst.msk [vmem:[%s197_s1 + $0x50] sm:$0xff] %vm64_vm0, %v58_v18 }
 0x102   :  { %v59_v19 = vpop.trf.xlu0 }
 0x103   :  { %76 = vst.msk [vmem:[%s197_s1 + $0x58] sm:$0xff] %vm64_vm0, %v59_v19 }
 0x10a   :  { %v60_v20 = vpop.trf.xlu0 }
 0x10b   :  { %77 = vst.msk [vmem:[%s197_s1 + $0x60] sm:$0xff] %vm64_vm0, %v60_v20 }
 0x112   :  { %v61_v21 = vpop.trf.xlu0 }
 0x113   :  { %78 = vst.msk [vmem:[%s197_s1 + $0x68] sm:$0xff] %vm64_vm0, %v61_v21 }
 0x11a   :  { %v62_v22 = vpop.trf.xlu0 }
 0x11b   :  { %79 = vst.msk [vmem:[%s197_s1 + $0x70] sm:$0xff] %vm64_vm0, %v62_v22 }
 0x122   :  { %v63_v23 = vpop.trf.xlu0 }
 0x123   :  { %80 = vst.msk [vmem:[%s197_s1 + $0x78] sm:$0xff] %vm64_vm0, %v63_v23 }
 0x124   :  { %85 = vsyncpa [#allocation3], 1 }

</bundles_post_ra>
